<compile_context>
chip_gen: v5e
topology: v5e:2x2
jax: 0.10.0
libtpu: 0.0.40
codegen_flags: <defaults>
</compile_context>

<pallas_src>
import functools

import jax
import jax.numpy as jnp
from jax.experimental import pallas as pl
from jax.experimental.pallas import tpu as pltpu

LANE = 128   # vreg lane width
SUBLANE = 8  # f32 sublane packing


def _round_up(n, m):
    return ((n + m - 1) // m) * m


def _padded_vmem_bytes(rows, cols, itemsize):
    # VMEM stores arrays in (8, 128) tiles -> account for lane/sublane padding.
    return _round_up(rows, SUBLANE) * _round_up(cols, LANE) * itemsize


def mlp_kernel(x_ref, w1_ref, b1_ref, w2_ref, b2_ref, o_ref):
    # x: (TB, Cin) f32, w1: (Cin, H_p) bf16, b1: (1, H_p) f32,
    # w2: (H_p, Cout_p) bf16, b2: (1, Cout_p) f32, o: (TB, Cout) f32.
    x = x_ref[...].astype(jnp.bfloat16)

    # Layer 0: bf16 MXU matmul with f32 accumulation, then f32 bias + ReLU.
    h = jnp.dot(x, w1_ref[...], preferred_element_type=jnp.float32)
    h = jnp.maximum(h + b1_ref[...], 0.0)

    # Layer 1 (last): bf16 MXU matmul, f32 bias + sigmoid (EUP). Padded H/Cout
    # columns are zero / discarded; slicing lanes is free at the vreg level.
    y = jnp.dot(h.astype(jnp.bfloat16), w2_ref[...],
                preferred_element_type=jnp.float32)
    y = jax.nn.sigmoid(y + b2_ref[...])

    cout = o_ref.shape[1]
    o_ref[...] = y[:, :cout].astype(o_ref.dtype)


@functools.partial(jax.jit, static_argnames=("tile_b",))
def mlp_forward(x, w1, b1, w2, b2, *, tile_b=2048):
    """x:(B,Cin) f32, w1:(Cin,H), b1:(H,), w2:(H,Cout), b2:(Cout,) -> (B,Cout) f32."""
    B, Cin = x.shape
    Cin_w, H = w1.shape
    H_w, Cout = w2.shape
    assert Cin == Cin_w and H == H_w and b1.shape == (H,) and b2.shape == (Cout,)

    # Batch tile: multiple of the f32 sublane; keep >=2 grid steps when B allows
    # so the "parallel" axis can shard across both v7x TensorCores.
    tile_b = max(SUBLANE, min(tile_b, _round_up(pl.cdiv(B, 2), SUBLANE)))
    grid = (pl.cdiv(B, tile_b),)  # ragged last tile handled by Pallas masking

    # Pad only the resident weights/biases to full lane width (a few KiB; the
    # streamed x / output keep their true widths). Zero padding preserves math.
    H_p = _round_up(H, LANE)
    Cout_p = _round_up(Cout, LANE)
    f32, bf16 = jnp.float32, jnp.bfloat16
    w1_p = jnp.zeros((Cin, H_p), bf16).at[:, :H].set(w1.astype(bf16))
    b1_p = jnp.zeros((1, H_p), f32).at[0, :H].set(b1.astype(f32))
    w2_p = jnp.zeros((H_p, Cout_p), bf16).at[:H, :Cout].set(w2.astype(bf16))
    b2_p = jnp.zeros((1, Cout_p), f32).at[0, :Cout].set(b2.astype(f32))

    # VMEM budget: double-buffered x/out tiles + resident weights, (8,128)-tile
    # aware, 2x headroom, capped at 32 MiB (<= scoped default on v6e/v7x, far
    # under every generation's physical VMEM).
    vmem_bytes = (
        2 * _padded_vmem_bytes(tile_b, Cin, 4)      # x tiles (f32, double-buffered)
        + 2 * _padded_vmem_bytes(tile_b, Cout, 4)   # out tiles (f32, double-buffered)
        + _padded_vmem_bytes(Cin, H_p, 2)           # w1 (resident, bf16)
        + _padded_vmem_bytes(H_p, Cout_p, 2)        # w2 (resident, bf16)
        + _padded_vmem_bytes(1, H_p, 4)             # b1
        + _padded_vmem_bytes(1, Cout_p, 4)          # b2
    )
    vmem_bytes = int(min(max(2 * vmem_bytes, 8 << 20), 32 << 20))

    # Advisory cost estimate with real (unpadded) dimensions.
    cost = pl.CostEstimate(
        flops=2 * B * (Cin * H + H * Cout),
        transcendentals=B * Cout,  # sigmoid
        bytes_accessed=(B * Cin * 4 + Cin * H * 2 + H * 4
                        + H * Cout * 2 + Cout * 4 + B * Cout * 4),
    )

    out = pl.pallas_call(
        mlp_kernel,
        out_shape=jax.ShapeDtypeStruct((B, Cout), f32),
        grid=grid,
        in_specs=[
            pl.BlockSpec((tile_b, Cin), lambda i: (i, 0)),      # x: streamed per tile
            pl.BlockSpec((Cin, H_p), lambda i: (0, 0)),         # w1: resident
            pl.BlockSpec((1, H_p), lambda i: (0, 0)),           # b1: resident
            pl.BlockSpec((H_p, Cout_p), lambda i: (0, 0)),      # w2: resident
            pl.BlockSpec((1, Cout_p), lambda i: (0, 0)),        # b2: resident
        ],
        out_specs=pl.BlockSpec((tile_b, Cout), lambda i: (i, 0)),
        compiler_params=pltpu.CompilerParams(
            dimension_semantics=("parallel",),
            vmem_limit_bytes=vmem_bytes,
        ),
        cost_estimate=cost,
    )(x.astype(f32), w1_p, b1_p, w2_p, b2_p)
    return out


def init_linear_params(key, fan_in, fan_out):
    # Mimic torch.nn.Linear default init: U(-1/sqrt(fan_in), 1/sqrt(fan_in)).
    kw, kb = jax.random.split(key)
    bound = 1.0 / jnp.sqrt(float(fan_in))
    # Stored transposed: (fan_in, fan_out), so the kernel computes x @ W.
    w = jax.random.uniform(kw, (fan_in, fan_out), jnp.float32, -bound, bound)
    b = jax.random.uniform(kb, (fan_out,), jnp.float32, -bound, bound)
    return w, b


def _reference(x, w1, b1, w2, b2):
    # Eval-mode PyTorch forward, with MXU operands rounded to bf16 exactly as the
    # kernel does (accumulation / bias / activations stay f32).
    f32 = jnp.float32
    xb = x.astype(jnp.bfloat16).astype(f32)
    w1b = w1.astype(jnp.bfloat16).astype(f32)
    w2b = w2.astype(jnp.bfloat16).astype(f32)
    h = jnp.maximum(xb @ w1b + b1, 0.0)
    hb = h.astype(jnp.bfloat16).astype(f32)
    return jax.nn.sigmoid(hb @ w2b + b2)


if __name__ == "__main__":
    key = jax.random.PRNGKey(0)
    k_x, k_l0, k_l1, k_x2 = jax.random.split(key, 4)

    batch = 8
    in_channels = 16
    hidden_channels = 32
    out_channels = 1

    w1, b1 = init_linear_params(k_l0, in_channels, hidden_channels)
    w2, b2 = init_linear_params(k_l1, hidden_channels, out_channels)

    # Small case (single grid step, block == full batch).
    x = jax.random.normal(k_x, (batch, in_channels), jnp.float32)
    out = jax.block_until_ready(mlp_forward(x, w1, b1, w2, b2))
    ref = _reference(x, w1, b1, w2, b2)
    assert out.shape == (batch, out_channels)
    assert jnp.allclose(out, ref, atol=1e-4, rtol=1e-4)

    # Larger case: 2 grid steps with a ragged final tile (boundary masking).
    x2 = jax.random.normal(k_x2, (200, in_channels), jnp.float32)
    out2 = jax.block_until_ready(mlp_forward(x2, w1, b1, w2, b2))
    ref2 = _reference(x2, w1, b1, w2, b2)
    assert out2.shape == (200, out_channels)
    assert jnp.allclose(out2, ref2, atol=1e-4, rtol=1e-4)

    print("KERNEL_OK")
</pallas_src>

<mosaic_0001>
module attributes {stable_mosaic.version = 11 : i64} {
  func.func @mlp_kernel(%arg0: i32, %arg1: memref<8x16xf32, #tpu.memory_space<vmem>>, %arg2: memref<16x128xbf16, #tpu.memory_space<vmem>>, %arg3: memref<1x128xf32, #tpu.memory_space<vmem>>, %arg4: memref<128x128xbf16, #tpu.memory_space<vmem>>, %arg5: memref<1x128xf32, #tpu.memory_space<vmem>>, %arg6: memref<8x1xf32, #tpu.memory_space<vmem>>) attributes {dimension_semantics = [#tpu.dimension_semantics<parallel>], iteration_bounds = array<i64: 1>, scalar_prefetch = 0 : i64, scratch_operands = 0 : i64, tpu.core_type = #tpu.core_type<tc>, window_params = [{transform_indices = @transform_0, window_bounds = array<i64: 8, 16>}, {pipeline_mode = #tpu.pipeline_mode<synchronous>, transform_indices = @transform_1, window_bounds = array<i64: 16, 128>}, {pipeline_mode = #tpu.pipeline_mode<synchronous>, transform_indices = @transform_2, window_bounds = array<i64: 1, 128>}, {pipeline_mode = #tpu.pipeline_mode<synchronous>, transform_indices = @transform_3, window_bounds = array<i64: 128, 128>}, {pipeline_mode = #tpu.pipeline_mode<synchronous>, transform_indices = @transform_4, window_bounds = array<i64: 1, 128>}, {transform_indices = @transform_5, window_bounds = array<i64: 8, 1>}]} {
    %c0 = arith.constant 0 : index
    %c0_0 = arith.constant 0 : index
    %0 = vector.load %arg1[%c0, %c0_0] : memref<8x16xf32, #tpu.memory_space<vmem>>, vector<8x16xf32>
    %1 = arith.truncf %0 : vector<8x16xf32> to vector<8x16xbf16>
    %c0_1 = arith.constant 0 : index
    %c0_2 = arith.constant 0 : index
    %2 = vector.load %arg2[%c0_1, %c0_2] : memref<16x128xbf16, #tpu.memory_space<vmem>>, vector<16x128xbf16>
    %cst = arith.constant dense<0.000000e+00> : vector<8x128xf32>
    %3 = tpu.matmul %1, %2, %cst {dimension_numbers = #tpu.dot_dimension_numbers<[1], [0], [0], [1], [0, 0, 1, 1], [], []>} : vector<8x16xbf16>, vector<16x128xbf16>, vector<8x128xf32> -> vector<8x128xf32>
    %c0_3 = arith.constant 0 : index
    %c0_4 = arith.constant 0 : index
    %4 = vector.load %arg3[%c0_3, %c0_4] : memref<1x128xf32, #tpu.memory_space<vmem>>, vector<1x128xf32>
    %5 = vector.broadcast %4 : vector<1x128xf32> to vector<8x128xf32>
    %6 = arith.addf %3, %5 : vector<8x128xf32>
    %cst_5 = arith.constant 0.000000e+00 : f32
    %7 = vector.broadcast %cst_5 : f32 to vector<8x128xf32>
    %8 = arith.maximumf %6, %7 : vector<8x128xf32>
    %9 = arith.truncf %8 : vector<8x128xf32> to vector<8x128xbf16>
    %c0_6 = arith.constant 0 : index
    %c0_7 = arith.constant 0 : index
    %10 = vector.load %arg4[%c0_6, %c0_7] : memref<128x128xbf16, #tpu.memory_space<vmem>>, vector<128x128xbf16>
    %cst_8 = arith.constant dense<0.000000e+00> : vector<8x128xf32>
    %11 = tpu.matmul %9, %10, %cst_8 {dimension_numbers = #tpu.dot_dimension_numbers<[1], [0], [0], [1], [0, 0, 1, 1], [], []>} : vector<8x128xbf16>, vector<128x128xbf16>, vector<8x128xf32> -> vector<8x128xf32>
    %c0_9 = arith.constant 0 : index
    %c0_10 = arith.constant 0 : index
    %12 = vector.load %arg5[%c0_9, %c0_10] : memref<1x128xf32, #tpu.memory_space<vmem>>, vector<1x128xf32>
    %13 = vector.broadcast %12 : vector<1x128xf32> to vector<8x128xf32>
    %14 = arith.addf %11, %13 : vector<8x128xf32>
    %15 = arith.negf %14 : vector<8x128xf32>
    %16 = math.exp %15 : vector<8x128xf32>
    %cst_11 = arith.constant 1.000000e+00 : f32
    %17 = vector.broadcast %cst_11 : f32 to vector<8x128xf32>
    %18 = arith.addf %17, %16 : vector<8x128xf32>
    %19 = arith.divf %17, %18 : vector<8x128xf32>
    %20 = vector.extract_strided_slice %19 {offsets = [0, 0], sizes = [8, 1], strides = [1, 1]} : vector<8x128xf32> to vector<8x1xf32>
    %c0_12 = arith.constant 0 : index
    %c0_13 = arith.constant 0 : index
    %21 = vector.load %arg6[%c0_12, %c0_13] : memref<8x1xf32, #tpu.memory_space<vmem>>, vector<8x1xf32>
    tpu.vector_store %arg6[%c0_12, %c0_13], %20 {strides = array<i32>} : memref<8x1xf32, #tpu.memory_space<vmem>>, vector<8x1xf32>,
    return
  }
  func.func @transform_0(%arg0: i32) -> (i32, i32) {
    %c0_i32 = arith.constant 0 : i32
    %c0_i32_0 = arith.constant 0 : i32
    return %arg0, %c0_i32 : i32, i32
  }
  func.func @transform_1(%arg0: i32) -> (i32, i32) {
    %c0_i32 = arith.constant 0 : i32
    %c0_i32_0 = arith.constant 0 : i32
    %c0_i32_1 = arith.constant 0 : i32
    return %c0_i32, %c0_i32_0 : i32, i32
  }
  func.func @transform_2(%arg0: i32) -> (i32, i32) {
    %c0_i32 = arith.constant 0 : i32
    %c0_i32_0 = arith.constant 0 : i32
    %c0_i32_1 = arith.constant 0 : i32
    return %c0_i32, %c0_i32_0 : i32, i32
  }
  func.func @transform_3(%arg0: i32) -> (i32, i32) {
    %c0_i32 = arith.constant 0 : i32
    %c0_i32_0 = arith.constant 0 : i32
    %c0_i32_1 = arith.constant 0 : i32
    return %c0_i32, %c0_i32_0 : i32, i32
  }
  func.func @transform_4(%arg0: i32) -> (i32, i32) {
    %c0_i32 = arith.constant 0 : i32
    %c0_i32_0 = arith.constant 0 : i32
    %c0_i32_1 = arith.constant 0 : i32
    return %c0_i32, %c0_i32_0 : i32, i32
  }
  func.func @transform_5(%arg0: i32) -> (i32, i32) {
    %c0_i32 = arith.constant 0 : i32
    %c0_i32_0 = arith.constant 0 : i32
    return %arg0, %c0_i32 : i32, i32
  }
}

</mosaic_0001>

<bundles_post_ra>
// kernel: mlp_forward.1
= control target key start
LH: loop header
LB: loop body
LE: loop exit
PB: predicated region body
PF: predicated region fallthrough
CT: control target
= control target key end

     0   :  { %vm35_vm0 = vcmask 130048   ;;  %vm154_vm4 = vcmask 7168   ;;  %s282_s1 = inlined_call_operand.vmem [shape: bf16[16,128], index: 1, kind: input, shape index: {}]   ;;  %s283_s0 = inlined_call_operand.vmem [shape: f32[8,16], index: 0, kind: input, shape index: {}]   ;;  %s284_s3 = inlined_call_operand.vmem [shape: bf16[128,128], index: 3, kind: input, shape index: {}]   ;;  %s285_s2 = inlined_call_operand.vmem [shape: f32[1,128], index: 2, kind: input, shape index: {}]   ;;  %s286_s4 = inlined_call_operand.vmem [shape: f32[1,128], index: 4, kind: input, shape index: {}]   ;;  %s287_s5 = inlined_call_operand.vmem [shape: f32[8,1], index: 5, kind: output, shape index: {}]  }
   0x1   :  { %v198_v0 = vld [vmem:[%s282_s1] sm:$0xff]  ;;  %v206_v2 = vld [vmem:[%s284_s3 + $0x38] sm:$0xff]  ;;  %v205_v4 = vld [vmem:[%s284_s3 + $0x30] sm:$0xff] }
   0x2   :  { %v21_v1 = vld [vmem:[%s283_s0] sm:$0xff]  ;;  %46 = vmatpush.bf16.msra.mxu0 %v198_v0  ;;  %122 = vmatpush.bf16.msra.mxu1 %v206_v2  ;;  %v204_v5 = vld [vmem:[%s284_s3 + $0x28] sm:$0xff]  ;;  %v202_v7 = vld [vmem:[%s284_s3 + $0x18] sm:$0xff] }
   0x3   :  { %v22_v3 = vpack.c.bf16 %v21_v1, %v21_v1  ;;  %v203_v6 = vld [vmem:[%s284_s3 + $0x20] sm:$0xff]  ;;  %v201_v8 = vld [vmem:[%s284_s3 + $0x10] sm:$0xff]  ;;  %v200_v9 = vld [vmem:[%s284_s3 + $0x8] sm:$0xff] }
   0x4   :  { %v199_v10 = vld [vmem:[%s284_s3] sm:$0xff] }
   0x5   :  { %164 = vmatmul.msk.bf16.vlgmr.msra.gmra.mxu0 %vm35_vm0, %v22_v3  ;;  %v207_v11 = vld [vmem:[%s285_s2] ss:$0 sm:$0xff] }
   0x6   :  { %123 = vmatpush.bf16.msra.mxu1 %v205_v4  ;;  %v208_v17 = vld [vmem:[%s286_s4] ss:$0 sm:$0xff] }
   0xa   :  { %124 = vmatpush.bf16.msra.mxu1 %v204_v5 }
   0xe   :  { %125 = vmatpush.bf16.msra.mxu1 %v203_v6 }
  0x12   :  { %126 = vmatpush.bf16.msra.mxu1 %v202_v7 }
  0x16   :  { %127 = vmatpush.bf16.msra.mxu1 %v201_v8 }
  0x1a   :  { %128 = vmatpush.bf16.msra.mxu1 %v200_v9 }
  0x1e   :  { %129 = vmatpush.bf16.msra.mxu1 %v199_v10 }
  0x82   :  { %v48_v12 = vpop.f32.mrf.mxu0 }
  0x83   :  { %v49_v13 = vadd.f32 %v207_v11, %v48_v12 }
  0x85   :  { %v52_v14 = vmax.f32 %v49_v13, 0.0 }
  0x87   :  { %v53_v15 = vpack.c.bf16 %v52_v14, %v52_v14 }
  0x89   :  { %130 = vmatmul.bf16.vlgmr.msra.gmra.mxu1 %v53_v15 }
  0x8a   :  { %v50_v16 = vpop.f32.mrf.mxu0 }
 0x106   :  { %v131_v18 = vpop.f32.mrf.mxu1 }
 0x107   :  { %v132_v19 = vadd.f32 %v208_v17, %v131_v18 }
 0x109   :  { %v197_v20 = vmul.f32 -1.442695, %v132_v19 }
 0x10b   :  { %209 = vpow2.f32 %v197_v20 }
 0x10e   :  { %v133_v21 = vpop.f32.mrf.mxu1 }
 0x111   :  { %v210_v22 = vpop.eup %209 }
 0x112   :  { %v138_v23 = vadd.f32 1.0, %v210_v22 }
 0x114   :  { %211 = vrcp.f32 %v138_v23  ;;  %v150_v27 = vand.u32 2147483648, %v138_v23  ;;  %v148_v29 = vand.u32 2147483647, %v138_v23  ;;  %vm144_vm2 = vweird.f32 %v138_v23 }
 0x116   :  { %v151_v31 = vor.u32 1.1754944e-38, %v150_v27  ;;  %vm149_vm5 = vcmp.eq.f32.partialorder %v148_v29, 8.507059e+37 }
 0x11a   :  { %v212_v24 = vpop.eup %211 }
 0x11b   :  { %v140_v25 = vmul.f32 %v212_v24, %v138_v23  ;;  %vm145_vm1 = vweird.f32 %v212_v24 }
 0x11c   :  { %vm146_vm3 = vmor %vm144_vm2, %vm145_vm1 }
 0x11d   :  { %v141_v26 = vsub.f32 1.0, %v140_v25 }
 0x11f   :  { %v142_v28 = vmul.f32 %v212_v24, %v141_v26 }
 0x121   :  { %v143_v30 = vadd.f32 %v212_v24, %v142_v28 }
 0x123   :  { %v147_v32 = vsel %vm146_vm3, %v212_v24, %v143_v30 }
 0x124   :  { %v152_v33 = vsel %vm149_vm5, %v151_v31, %v147_v32 }
 0x125   :  { %155 = vst.msk [vmem:[%s287_s5] sm:$0xff] %vm154_vm4, %v152_v33 }

</bundles_post_ra>
